<compile_context>
chip_gen: v7x
topology: tpu7x:2x2x1
jax: 0.10.0
libtpu: 0.0.40
codegen_flags: <defaults>
</compile_context>

<pallas_src>
import functools
import math

import jax
import jax.numpy as jnp
from jax.experimental import pallas as pl
from jax.experimental.pallas import tpu as pltpu

_INV_SQRT2 = 1.0 / math.sqrt(2.0)


def _round_up(v, m):
    return (v + m - 1) // m * m


def _kernel(x_ref, w1_ref, b1_ref, w2_ref, b2_ref, o_ref):
    # x_ref: (tm, Dp) f32 row tile.  Pre-affine / layer-scale are already folded
    # into w1/b1/w2/b2, so the body is: gelu(x @ w1 + b1) @ w2 + b2 + x.
    x = x_ref[...].astype(jnp.float32)

    # MXU matmuls in bf16 with f32 accumulation.
    h = jnp.dot(x.astype(jnp.bfloat16), w1_ref[...],
                preferred_element_type=jnp.float32) + b1_ref[...]
    # Exact (erf) GELU -> matches torch.nn.GELU default.
    h = 0.5 * h * (1.0 + jax.lax.erf(h * _INV_SQRT2))
    f = jnp.dot(h.astype(jnp.bfloat16), w2_ref[...],
                preferred_element_type=jnp.float32) + b2_ref[...]

    # Residual add in f32 against the un-cast input row tile.
    o_ref[...] = (f + x).astype(o_ref.dtype)


@functools.partial(jax.jit, static_argnames=("block_rows",))
def pre_affine_post_layer_scale(x, g, b, scale, w1, b1, w2, b2, *, block_rows=256):
    B, N, D = x.shape
    H = w1.shape[1]
    rows = B * N
    f32 = jnp.float32

    g1 = g.reshape(D).astype(f32)
    b_aff = b.reshape(D).astype(f32)
    s = scale.reshape(D).astype(f32)

    # Fold pre-affine (x*g + b) and post layer-scale into the weights:
    #   gelu((x*g+b) @ w1 + b1) @ w2 * s + b2*s + x
    # = gelu(x @ (diag(g) @ w1) + (b @ w1 + b1)) @ (w2 * s) + (b2 * s) + x
    w1f = g1[:, None] * w1.astype(f32)
    b1f = b1.astype(f32) + b_aff @ w1.astype(f32)
    w2f = w2.astype(f32) * s[None, :]
    b2f = b2.astype(f32) * s

    # Lane-dense padding: channel / hidden dims -> multiples of 128.
    Dp = _round_up(D, 128)
    Hp = _round_up(H, 128)

    # Row tile: multiple of 128; pad rows to a whole number of tiles.
    tm = min(block_rows, _round_up(rows, 128))
    rows_p = _round_up(rows, tm)
    grid = rows_p // tm

    out_dtype = x.dtype
    out_isize = jnp.dtype(out_dtype).itemsize

    x2 = jnp.pad(x.reshape(rows, D).astype(f32),
                 ((0, rows_p - rows), (0, Dp - D)))
    w1p = jnp.pad(w1f, ((0, Dp - D), (0, Hp - H))).astype(jnp.bfloat16)
    w2p = jnp.pad(w2f, ((0, Hp - H), (0, Dp - D))).astype(jnp.bfloat16)
    b1p = jnp.pad(b1f, (0, Hp - H)).reshape(1, Hp)
    b2p = jnp.pad(b2f, (0, Dp - D)).reshape(1, Dp)

    # Advisory cost estimate for the XLA scheduler.
    cost = pl.CostEstimate(
        flops=4 * rows_p * Dp * Hp,                       # two matmuls (2*M*K*N each)
        transcendentals=rows_p * Hp,                      # erf per hidden element
        bytes_accessed=(rows_p * Dp * (4 + out_isize)
                        + (Dp * Hp + Hp * Dp) * 2
                        + (Hp + Dp) * 4),
    )

    # Explicit VMEM budget from the actual tile sizes (with headroom), clamped
    # so it is valid on v5e/v6e (128 MiB) and v7x (64 MiB physical).
    vmem_bytes = (
        2 * tm * Dp * 4                    # double-buffered x tiles (f32)
        + 2 * tm * Dp * out_isize          # double-buffered out tiles
        + 2 * (Dp * Hp + Hp * Dp) * 2      # double-buffered bf16 weights
        + 2 * (Hp + Dp) * 4                # biases
        + tm * Hp * 4 + tm * Dp * 4        # f32 hidden / temporaries
    )
    vmem_limit = int(min(max(vmem_bytes * 3 // 2, 32 * 1024 * 1024),
                         64 * 1024 * 1024))

    out = pl.pallas_call(
        _kernel,
        out_shape=jax.ShapeDtypeStruct((rows_p, Dp), out_dtype),
        grid_spec=pltpu.PrefetchScalarGridSpec(
            num_scalar_prefetch=0,
            grid=(grid,),
            in_specs=[
                pl.BlockSpec((tm, Dp), lambda i: (i, 0)),   # x row tile
                pl.BlockSpec((Dp, Hp), lambda i: (0, 0)),   # w1 (resident across grid)
                pl.BlockSpec((1, Hp), lambda i: (0, 0)),    # b1
                pl.BlockSpec((Hp, Dp), lambda i: (0, 0)),   # w2 (resident across grid)
                pl.BlockSpec((1, Dp), lambda i: (0, 0)),    # b2
            ],
            out_specs=pl.BlockSpec((tm, Dp), lambda i: (i, 0)),
        ),
        compiler_params=pltpu.CompilerParams(
            dimension_semantics=("parallel",),
            vmem_limit_bytes=vmem_limit),
        cost_estimate=cost,
    )(x2, w1p, b1p, w2p, b2p)

    return out[:rows, :D].reshape(B, N, D)


if __name__ == "__main__":
    # Small shapes consistent with the module's (batch, seq, dim) convention.
    B, N, D, H = 2, 8, 32, 64
    init_eps = 1e-5

    key = jax.random.PRNGKey(0)
    kx, kw1, kw2, kb1, kb2 = jax.random.split(key, 5)

    x = jax.random.normal(kx, (B, N, D), dtype=jnp.float32)

    # PreAffinePostLayerScale parameters (deterministic, per __init__):
    g = jnp.ones((1, 1, D), dtype=jnp.float32)            # Affine.g
    b = jnp.zeros((1, 1, D), dtype=jnp.float32)           # Affine.b
    scale = jnp.full((1, 1, D), init_eps, jnp.float32)    # layer scale

    # fn = Linear(D, H) -> GELU -> Linear(H, D); deterministic random weights.
    w1 = jax.random.normal(kw1, (D, H), dtype=jnp.float32) * (1.0 / math.sqrt(D))
    b1 = jax.random.normal(kb1, (H,), dtype=jnp.float32) * 0.01
    w2 = jax.random.normal(kw2, (H, D), dtype=jnp.float32) * (1.0 / math.sqrt(H))
    b2 = jax.random.normal(kb2, (D,), dtype=jnp.float32) * 0.01

    out = pre_affine_post_layer_scale(x, g, b, scale, w1, b1, w2, b2)
    out = jax.block_until_ready(out)

    # Pure-JAX f32 reference (unfolded, exactly the PyTorch module's math).
    def ref(x):
        y = x * g + b
        h = jnp.dot(y, w1) + b1
        h = 0.5 * h * (1.0 + jax.lax.erf(h / math.sqrt(2.0)))
        f = jnp.dot(h, w2) + b2
        return f * scale + x

    expected = ref(x)
    assert out.shape == (B, N, D)
    # bf16 matmul error only touches the fn branch, which is scaled by 1e-5, so
    # the absolute error vs. the f32 reference is ~1e-7.
    assert jnp.allclose(out, expected, atol=1e-4, rtol=1e-4)

    print("KERNEL_OK")
</pallas_src>

<mosaic_0001>
module attributes {stable_mosaic.version = 11 : i64} {
  func.func @_kernel(%arg0: i32, %arg1: memref<128x128xf32, #tpu.memory_space<vmem>>, %arg2: memref<128x128xbf16, #tpu.memory_space<vmem>>, %arg3: memref<1x128xf32, #tpu.memory_space<vmem>>, %arg4: memref<128x128xbf16, #tpu.memory_space<vmem>>, %arg5: memref<1x128xf32, #tpu.memory_space<vmem>>, %arg6: memref<128x128xf32, #tpu.memory_space<vmem>>) attributes {dimension_semantics = [#tpu.dimension_semantics<parallel>], iteration_bounds = array<i64: 1>, scalar_prefetch = 0 : i64, scratch_operands = 0 : i64, tpu.core_type = #tpu.core_type<tc>, window_params = [{transform_indices = @transform_0, window_bounds = array<i64: 128, 128>}, {pipeline_mode = #tpu.pipeline_mode<synchronous>, transform_indices = @transform_1, window_bounds = array<i64: 128, 128>}, {pipeline_mode = #tpu.pipeline_mode<synchronous>, transform_indices = @transform_2, window_bounds = array<i64: 1, 128>}, {pipeline_mode = #tpu.pipeline_mode<synchronous>, transform_indices = @transform_3, window_bounds = array<i64: 128, 128>}, {pipeline_mode = #tpu.pipeline_mode<synchronous>, transform_indices = @transform_4, window_bounds = array<i64: 1, 128>}, {transform_indices = @transform_5, window_bounds = array<i64: 128, 128>}]} {
    %c0 = arith.constant 0 : index
    %c0_0 = arith.constant 0 : index
    %0 = vector.load %arg1[%c0, %c0_0] : memref<128x128xf32, #tpu.memory_space<vmem>>, vector<128x128xf32>
    %1 = arith.truncf %0 : vector<128x128xf32> to vector<128x128xbf16>
    %c0_1 = arith.constant 0 : index
    %c0_2 = arith.constant 0 : index
    %2 = vector.load %arg2[%c0_1, %c0_2] : memref<128x128xbf16, #tpu.memory_space<vmem>>, vector<128x128xbf16>
    %cst = arith.constant dense<0.000000e+00> : vector<128x128xf32>
    %3 = tpu.matmul %1, %2, %cst {dimension_numbers = #tpu.dot_dimension_numbers<[1], [0], [0], [1], [0, 0, 1, 1], [], []>} : vector<128x128xbf16>, vector<128x128xbf16>, vector<128x128xf32> -> vector<128x128xf32>
    %c0_3 = arith.constant 0 : index
    %c0_4 = arith.constant 0 : index
    %4 = vector.load %arg3[%c0_3, %c0_4] : memref<1x128xf32, #tpu.memory_space<vmem>>, vector<1x128xf32>
    %5 = vector.broadcast %4 : vector<1x128xf32> to vector<128x128xf32>
    %6 = arith.addf %3, %5 : vector<128x128xf32>
    %cst_5 = arith.constant 5.000000e-01 : f32
    %7 = vector.broadcast %cst_5 : f32 to vector<128x128xf32>
    %8 = arith.mulf %7, %6 : vector<128x128xf32>
    %cst_6 = arith.constant 0.707106769 : f32
    %9 = vector.broadcast %cst_6 : f32 to vector<128x128xf32>
    %10 = arith.mulf %6, %9 : vector<128x128xf32>
    %11 = math.erf %10 : vector<128x128xf32>
    %cst_7 = arith.constant 1.000000e+00 : f32
    %12 = vector.broadcast %cst_7 : f32 to vector<128x128xf32>
    %13 = arith.addf %12, %11 : vector<128x128xf32>
    %14 = arith.mulf %8, %13 : vector<128x128xf32>
    %15 = arith.truncf %14 : vector<128x128xf32> to vector<128x128xbf16>
    %c0_8 = arith.constant 0 : index
    %c0_9 = arith.constant 0 : index
    %16 = vector.load %arg4[%c0_8, %c0_9] : memref<128x128xbf16, #tpu.memory_space<vmem>>, vector<128x128xbf16>
    %cst_10 = arith.constant dense<0.000000e+00> : vector<128x128xf32>
    %17 = tpu.matmul %15, %16, %cst_10 {dimension_numbers = #tpu.dot_dimension_numbers<[1], [0], [0], [1], [0, 0, 1, 1], [], []>} : vector<128x128xbf16>, vector<128x128xbf16>, vector<128x128xf32> -> vector<128x128xf32>
    %c0_11 = arith.constant 0 : index
    %c0_12 = arith.constant 0 : index
    %18 = vector.load %arg5[%c0_11, %c0_12] : memref<1x128xf32, #tpu.memory_space<vmem>>, vector<1x128xf32>
    %19 = vector.broadcast %18 : vector<1x128xf32> to vector<128x128xf32>
    %20 = arith.addf %17, %19 : vector<128x128xf32>
    %21 = arith.addf %20, %0 : vector<128x128xf32>
    %c0_13 = arith.constant 0 : index
    %c0_14 = arith.constant 0 : index
    %22 = vector.load %arg6[%c0_13, %c0_14] : memref<128x128xf32, #tpu.memory_space<vmem>>, vector<128x128xf32>
    tpu.vector_store %arg6[%c0_13, %c0_14], %21 {strides = array<i32>} : memref<128x128xf32, #tpu.memory_space<vmem>>, vector<128x128xf32>,
    return
  }
  func.func @transform_0(%arg0: i32) -> (i32, i32) {
    %c0_i32 = arith.constant 0 : i32
    %c0_i32_0 = arith.constant 0 : i32
    return %arg0, %c0_i32 : i32, i32
  }
  func.func @transform_1(%arg0: i32) -> (i32, i32) {
    %c0_i32 = arith.constant 0 : i32
    %c0_i32_0 = arith.constant 0 : i32
    %c0_i32_1 = arith.constant 0 : i32
    return %c0_i32, %c0_i32_0 : i32, i32
  }
  func.func @transform_2(%arg0: i32) -> (i32, i32) {
    %c0_i32 = arith.constant 0 : i32
    %c0_i32_0 = arith.constant 0 : i32
    %c0_i32_1 = arith.constant 0 : i32
    return %c0_i32, %c0_i32_0 : i32, i32
  }
  func.func @transform_3(%arg0: i32) -> (i32, i32) {
    %c0_i32 = arith.constant 0 : i32
    %c0_i32_0 = arith.constant 0 : i32
    %c0_i32_1 = arith.constant 0 : i32
    return %c0_i32, %c0_i32_0 : i32, i32
  }
  func.func @transform_4(%arg0: i32) -> (i32, i32) {
    %c0_i32 = arith.constant 0 : i32
    %c0_i32_0 = arith.constant 0 : i32
    %c0_i32_1 = arith.constant 0 : i32
    return %c0_i32, %c0_i32_0 : i32, i32
  }
  func.func @transform_5(%arg0: i32) -> (i32, i32) {
    %c0_i32 = arith.constant 0 : i32
    %c0_i32_0 = arith.constant 0 : i32
    return %arg0, %c0_i32 : i32, i32
  }
}

</mosaic_0001>

<bundles_post_ra>
// kernel: pre_affine_post_layer_scale.1
= control target key start
LH: loop header
LB: loop body
LE: loop exit
PB: predicated region body
PF: predicated region fallthrough
CT: control target
= control target key end

     0   :  { %s937_s1 = inlined_call_operand.vmem [shape: bf16[128,128], index: 1, kind: input, shape index: {}]   ;;  %s938_s0 = inlined_call_operand.vmem [shape: f32[128,128], index: 0, kind: input, shape index: {}]   ;;  %s939_s3 = inlined_call_operand.vmem [shape: bf16[128,128], index: 3, kind: input, shape index: {}]   ;;  %s940_s2 = inlined_call_operand.vmem [shape: f32[1,128], index: 2, kind: input, shape index: {}]   ;;  %s941_s4 = inlined_call_operand.vmem [shape: f32[1,128], index: 4, kind: input, shape index: {}]   ;;  %s942_s5 = inlined_call_operand.vmem [shape: f32[128,128], index: 5, kind: output, shape index: {}]  }
   0x1   :  { %v619_v0 = vld [vmem:[%s937_s1] sm:$0xff]   ;;  %v620_v1 = vld [vmem:[%s937_s1 + $0x8] sm:$0xff]   ;;  %v621_v2 = vld [vmem:[%s937_s1 + $0x10] sm:$0xff]  }
   0x2   :  { %555 = vmatprep.subr.bf16.mxu0 %v619_v0  ;;  %v622_v3 = vld [vmem:[%s937_s1 + $0x18] sm:$0xff]   ;;  %v712_v4 = vld [vmem:[%s938_s0] sm:$0xff]  ;;  %v717_v5 = vld [vmem:[%s938_s0 + $0x8] sm:$0xff] }
   0x3   :  { %556 = vmatpush3.bf16.msra.mxu0 %v619_v0  ;;  %v37_v6 = vpack.c.bf16 %v717_v5, %v712_v4  ;;  %v623_v7 = vld [vmem:[%s937_s1 + $0x20] sm:$0xff]   ;;  %v624_v8 = vld [vmem:[%s937_s1 + $0x28] sm:$0xff]   ;;  %v625_v11 = vld [vmem:[%s937_s1 + $0x30] sm:$0xff]  }
   0x4   :  { %557 = vmatprep.subr.bf16.mxu0 %v620_v1  ;;  %v627_v9 = vld [vmem:[%s939_s3] sm:$0xff]   ;;  %v628_v10 = vld [vmem:[%s939_s3 + $0x8] sm:$0xff]   ;;  %v626_v12 = vld [vmem:[%s937_s1 + $0x38] sm:$0xff]  }
   0x5   :  { %571 = vmatprep.mubr.bf16.mxu0 %v37_v6  ;;  %587 = vmatprep.subr.bf16.mxu1 %v627_v9  ;;  %v742_v13 = vld [vmem:[%s938_s0 + $0x10] sm:$0xff]  ;;  %v747_v14 = vld [vmem:[%s938_s0 + $0x18] sm:$0xff]  ;;  %v752_v15 = vld [vmem:[%s938_s0 + $0x20] sm:$0xff] }
   0x6   :  { %588 = vmatpush3.bf16.msra.mxu1 %v627_v9  ;;  %v757_v16 = vld [vmem:[%s938_s0 + $0x28] sm:$0xff]  ;;  %v38_v17 = vpack.c.bf16 %v747_v14, %v742_v13  ;;  %v766_v19 = vld [vmem:[%s938_s0 + $0x30] sm:$0xff]  ;;  %v771_v20 = vld [vmem:[%s938_s0 + $0x38] sm:$0xff] }
   0x7   :  { %558 = vmatpush3.bf16.msra.mxu0 %v620_v1  ;;  %589 = vmatprep.subr.bf16.mxu1 %v628_v10  ;;  %v39_v18 = vpack.c.bf16 %v757_v16, %v752_v15  ;;  %v776_v21 = vld [vmem:[%s938_s0 + $0x40] sm:$0xff]  ;;  %v781_v22 = vld [vmem:[%s938_s0 + $0x48] sm:$0xff]  ;;  %v40_v23 = vpack.c.bf16 %v771_v20, %v766_v19  ;;  %v790_v25 = vld [vmem:[%s938_s0 + $0x50] sm:$0xff] }
   0x8   :  { %559 = vmatprep.subr.bf16.mxu0 %v621_v2  ;;  %v41_v24 = vpack.c.bf16 %v781_v22, %v776_v21  ;;  %v795_v26 = vld [vmem:[%s938_s0 + $0x58] sm:$0xff]  ;;  %v800_v27 = vld [vmem:[%s938_s0 + $0x60] sm:$0xff]  ;;  %v805_v28 = vld [vmem:[%s938_s0 + $0x68] sm:$0xff] }
   0x9   :  { %v42_v29 = vpack.c.bf16 %v795_v26, %v790_v25  ;;  %v43_v30 = vpack.c.bf16 %v805_v28, %v800_v27  ;;  %v814_v31 = vld [vmem:[%s938_s0 + $0x70] sm:$0xff]  ;;  %v819_v32 = vld [vmem:[%s938_s0 + $0x78] sm:$0xff]  ;;  %v631_v36 = vld [vmem:[%s939_s3 + $0x20] sm:$0xff]  }
   0xa   :  { %590 = vmatpush3.bf16.msra.mxu1 %v628_v10  ;;  %v44_v33 = vpack.c.bf16 %v819_v32, %v814_v31  ;;  %v629_v34 = vld [vmem:[%s939_s3 + $0x10] sm:$0xff]   ;;  %v630_v35 = vld [vmem:[%s939_s3 + $0x18] sm:$0xff]   ;;  %v632_v37 = vld [vmem:[%s939_s3 + $0x28] sm:$0xff]  }
   0xb   :  { %560 = vmatpush3.bf16.msra.mxu0 %v621_v2  ;;  %591 = vmatprep.subr.bf16.mxu1 %v629_v34  ;;  %v633_v38 = vld [vmem:[%s939_s3 + $0x30] sm:$0xff]   ;;  %v634_v39 = vld [vmem:[%s939_s3 + $0x38] sm:$0xff]   ;;  %v844_v40 = vld [vmem:[%s940_s2] ss:$0 sm:$0xff] }
   0xc   :  { %561 = vmatprep.subr.bf16.mxu0 %v622_v3 }
   0xe   :  { %592 = vmatpush3.bf16.msra.mxu1 %v629_v34 }
   0xf   :  { %562 = vmatpush3.bf16.msra.mxu0 %v622_v3  ;;  %593 = vmatprep.subr.bf16.mxu1 %v630_v35 }
  0x10   :  { %563 = vmatprep.subr.bf16.mxu0 %v623_v7 }
  0x12   :  { %594 = vmatpush3.bf16.msra.mxu1 %v630_v35 }
  0x13   :  { %564 = vmatpush3.bf16.msra.mxu0 %v623_v7  ;;  %595 = vmatprep.subr.bf16.mxu1 %v631_v36 }
  0x14   :  { %565 = vmatprep.subr.bf16.mxu0 %v624_v8 }
  0x16   :  { %596 = vmatpush3.bf16.msra.mxu1 %v631_v36 }
  0x17   :  { %566 = vmatpush3.bf16.msra.mxu0 %v624_v8  ;;  %597 = vmatprep.subr.bf16.mxu1 %v632_v37 }
  0x18   :  { %567 = vmatprep.subr.bf16.mxu0 %v625_v11 }
  0x1a   :  { %598 = vmatpush3.bf16.msra.mxu1 %v632_v37 }
  0x1b   :  { %568 = vmatpush3.bf16.msra.mxu0 %v625_v11  ;;  %599 = vmatprep.subr.bf16.mxu1 %v633_v38 }
  0x1c   :  { %569 = vmatprep.subr.bf16.mxu0 %v626_v12 }
  0x1e   :  { %600 = vmatpush3.bf16.msra.mxu1 %v633_v38 }
  0x1f   :  { %570 = vmatpush3.bf16.msra.mxu0 %v626_v12  ;;  %601 = vmatprep.subr.bf16.mxu1 %v634_v39 }
  0x22   :  { %572 = vmatmul.mubr.bf16.vlgmr.msra.gmra.mrb[0].mxu0 %v38_v17  ;;  %602 = vmatpush3.bf16.msra.mxu1 %v634_v39 }
  0x23   :  { %575 = vmatprep.mubr.bf16.mxu0 %v39_v18 }
  0x2a   :  { %576 = vmatmul.mubr.bf16.gmra.mrb[4].mxu0 %v40_v23 }
  0x2b   :  { %579 = vmatprep.mubr.bf16.mxu0 %v41_v24 }
  0x32   :  { %580 = vmatmul.mubr.bf16.gmra.mrb[8].mxu0 %v42_v29 }
  0x33   :  { %583 = vmatprep.mubr.bf16.mxu0 %v43_v30 }
  0x3a   :  { %584 = vmatmul.mubr.bf16.gmra.mrb[12].mxu0 %v44_v33 }
  0xf5   :  { %v573_v41 = vpop.f32.mrb[0].mxu0 }
  0xf6   :  { %v159_v42 = vadd.f32 %v573_v41, %v844_v40  ;;  %v150_v43 = vpop.f32.mrb[1].mxu0 }
  0xf7   :  { %v151_v44 = vadd.f32 %v844_v40, %v150_v43  ;;  %v574_v45 = vpop.f32.mrb[2].mxu0 }
  0xf8   :  { %v231_v46 = vmul.f32 0.70710677, %v159_v42  ;;  %v162_v47 = vadd.f32 %v574_v45, %v844_v40  ;;  %v153_v48 = vpop.f32.mrb[3].mxu0  ;;  %v215_v7 = vmul.f32 0.5, %v159_v42 }
  0xf9   :  { %v229_v49 = vmul.f32 0.70710677, %v151_v44  ;;  %v154_v50 = vadd.f32 %v844_v40, %v153_v48  ;;  %v213_v29 = vmul.f32 0.5, %v151_v44 }
  0xfa   :  { %635 = verf.f32 %v231_v46  ;;  %v232_v51 = vmul.f32 0.70710677, %v162_v47  ;;  %v216_v12 = vmul.f32 0.5, %v162_v47 }
  0xfb   :  { %637 = verf.f32 %v229_v49  ;;  %v230_v52 = vmul.f32 0.70710677, %v154_v50  ;;  %v214_v37 = vmul.f32 0.5, %v154_v50 }
  0xfc   :  { %639 = verf.f32 %v232_v51 }
  0xfd   :  { %641 = verf.f32 %v230_v52  ;;  %v577_v53 = vpop.f32.mrb[4].mxu0 }
  0xfe   :  { %v175_v54 = vadd.f32 %v577_v53, %v844_v40  ;;  %v166_v55 = vpop.f32.mrb[5].mxu0 }
  0xff   :  { %v167_v56 = vadd.f32 %v844_v40, %v166_v55  ;;  %v578_v57 = vpop.f32.mrb[6].mxu0 }
 0x100   :  { %v235_v58 = vmul.f32 0.70710677, %v175_v54  ;;  %v178_v59 = vadd.f32 %v578_v57, %v844_v40  ;;  %v169_v60 = vpop.f32.mrb[7].mxu0 }
 0x101   :  { %v233_v61 = vmul.f32 0.70710677, %v167_v56  ;;  %v170_v62 = vadd.f32 %v844_v40, %v169_v60  ;;  %v219_v60 = vmul.f32 0.5, %v175_v54 }
 0x102   :  { %643 = verf.f32 %v235_v58  ;;  %v236_v63 = vmul.f32 0.70710677, %v178_v59 }
 0x103   :  { %645 = verf.f32 %v233_v61  ;;  %v234_v0 = vmul.f32 0.70710677, %v170_v62  ;;  %v220_v61 = vmul.f32 0.5, %v178_v59 }
 0x104   :  { %v636_v1 = vpop.eup %635  ;;  %647 = verf.f32 %v236_v63 }
 0x105   :  { %v638_v2 = vpop.eup %637  ;;  %649 = verf.f32 %v234_v0  ;;  %v581_v3 = vpop.f32.mrb[8].mxu0  ;;  %v263_v8 = vadd.f32 1.0, %v636_v1 }
 0x106   :  { %v640_v6 = vpop.eup %639  ;;  %v855_v9 = vadd.f32 %v581_v3, %v844_v40  ;;  %v182_v10 = vpop.f32.mrb[9].mxu0  ;;  %v261_v24 = vadd.f32 1.0, %v638_v2  ;;  %v217_v2 = vmul.f32 0.5, %v167_v56  ;;  %v218_v3 = vmul.f32 0.5, %v170_v62 }
 0x107   :  { %v642_v11 = vpop.eup %641  ;;  %v264_v17 = vadd.f32 1.0, %v640_v6  ;;  %v858_v18 = vadd.f32 %v844_v40, %v182_v10  ;;  %v582_v23 = vpop.f32.mrb[10].mxu0  ;;  %v279_v41 = vmul.f32 %v263_v8, %v215_v7 }
 0x108   :  { %v239_v30 = vmul.f32 0.70710677, %v855_v9  ;;  %v194_v33 = vadd.f32 %v582_v23, %v844_v40  ;;  %v185_v34 = vpop.f32.mrb[11].mxu0  ;;  %v262_v35 = vadd.f32 1.0, %v642_v11  ;;  %v277_v45 = vmul.f32 %v261_v24, %v213_v29 }
 0x109   :  { %v280_v36 = vmul.f32 %v264_v17, %v216_v12  ;;  %v237_v38 = vmul.f32 0.70710677, %v858_v18  ;;  %v186_v39 = vadd.f32 %v844_v40, %v185_v34 }
 0x10a   :  { %651 = verf.f32 %v239_v30  ;;  %v240_v42 = vmul.f32 0.70710677, %v194_v33  ;;  %v278_v46 = vmul.f32 %v262_v35, %v214_v37 }
 0x10b   :  { %653 = verf.f32 %v237_v38  ;;  %v238_v43 = vmul.f32 0.70710677, %v186_v39  ;;  %v294_v47 = vpack.c.bf16 %v280_v36, %v279_v41  ;;  %v223_v41 = vmul.f32 0.5, %v855_v9 }
 0x10c   :  { %v644_v44 = vpop.eup %643  ;;  %655 = verf.f32 %v240_v42  ;;  %v293_v52 = vpack.c.bf16 %v278_v46, %v277_v45  ;;  %v224_v42 = vmul.f32 0.5, %v194_v33  ;;  %v222_v45 = vmul.f32 0.5, %v186_v39 }
 0x10d   :  { %v646_v48 = vpop.eup %645  ;;  %v267_v49 = vadd.f32 1.0, %v644_v44  ;;  %657 = verf.f32 %v238_v43  ;;  %v585_v51 = vpop.f32.mrb[12].mxu0 }
 0x10e   :  { %v648_v50 = vpop.eup %647  ;;  %v265_v53 = vadd.f32 1.0, %v646_v48  ;;  %v207_v55 = vadd.f32 %v585_v51, %v844_v40  ;;  %v198_v57 = vpop.f32.mrb[13].mxu0  ;;  %603 = vmatprep.mubr.bf16.mxu1 %v293_v52 }
 0x10f   :  { %v650_v58 = vpop.eup %649  ;;  %v268_v63 = vadd.f32 1.0, %v648_v50  ;;  %v199_v0 = vadd.f32 %v844_v40, %v198_v57  ;;  %v586_v1 = vpop.f32.mrb[14].mxu0  ;;  %604 = vmatmul.mubr.bf16.vlgmr.msra.gmra.mrb[0].mxu1 %v294_v47  ;;  %v283_v10 = vmul.f32 %v267_v49, %v219_v60 }
 0x110   :  { %v266_v6 = vadd.f32 1.0, %v650_v58  ;;  %v243_v7 = vmul.f32 0.70710677, %v207_v55  ;;  %v201_v8 = vpop.f32.mrb[15].mxu0  ;;  %v210_v17 = vadd.f32 %v586_v1, %v844_v40  ;;  %v281_v23 = vmul.f32 %v265_v53, %v217_v2 }
 0x111   :  { %v284_v11 = vmul.f32 %v268_v63, %v220_v61  ;;  %v241_v12 = vmul.f32 0.70710677, %v199_v0  ;;  %v202_v54 = vadd.f32 %v844_v40, %v201_v8  ;;  %v221_v40 = vmul.f32 0.5, %v858_v18 }
 0x112   :  { %v282_v24 = vmul.f32 %v266_v6, %v218_v3  ;;  %659 = verf.f32 %v243_v7  ;;  %v244_v59 = vmul.f32 0.70710677, %v210_v17  ;;  %v227_v33 = vmul.f32 0.5, %v207_v55 }
 0x113   :  { %661 = verf.f32 %v241_v12  ;;  %v296_v29 = vpack.c.bf16 %v284_v11, %v283_v10  ;;  %v242_v56 = vmul.f32 0.70710677, %v202_v54  ;;  %v228_v61 = vmul.f32 0.5, %v210_v17  ;;  %v514_v11 = vld [vmem:[%s941_s4] ss:$0 sm:$0xff] }
 0x114   :  { %v652_v30 = vpop.eup %651  ;;  %v295_v62 = vpack.c.bf16 %v282_v24, %v281_v23  ;;  %663 = verf.f32 %v244_v59  ;;  %v225_v18 = vmul.f32 0.5, %v199_v0  ;;  %v226_v39 = vmul.f32 0.5, %v202_v54 }
 0x115   :  { %v654_v34 = vpop.eup %653  ;;  %v271_v35 = vadd.f32 1.0, %v652_v30  ;;  %665 = verf.f32 %v242_v56 }
 0x116   :  { %v656_v36 = vpop.eup %655  ;;  %v269_v37 = vadd.f32 1.0, %v654_v34  ;;  %607 = vmatprep.mubr.bf16.mxu1 %v295_v62 }
 0x117   :  { %v658_v38 = vpop.eup %657  ;;  %v272_v43 = vadd.f32 1.0, %v656_v36  ;;  %608 = vmatmul.mubr.bf16.gmra.mrb[4].mxu1 %v296_v29  ;;  %v287_v44 = vmul.f32 %v271_v35, %v223_v41 }
 0x118   :  { %v270_v46 = vadd.f32 1.0, %v658_v38  ;;  %v285_v48 = vmul.f32 %v269_v37, %v221_v40 }
 0x119   :  { %v288_v47 = vmul.f32 %v272_v43, %v224_v42 }
 0x11a   :  { %v286_v49 = vmul.f32 %v270_v46, %v222_v45 }
 0x11b   :  { %v298_v51 = vpack.c.bf16 %v288_v47, %v287_v44 }
 0x11c   :  { %v660_v52 = vpop.eup %659  ;;  %v297_v50 = vpack.c.bf16 %v286_v49, %v285_v48 }
 0x11d   :  { %v662_v53 = vpop.eup %661  ;;  %v275_v57 = vadd.f32 1.0, %v660_v52 }
 0x11e   :  { %611 = vmatprep.mubr.bf16.mxu1 %v297_v50  ;;  %v664_v58 = vpop.eup %663  ;;  %v273_v60 = vadd.f32 1.0, %v662_v53 }
 0x11f   :  { %v666_v9 = vpop.eup %665  ;;  %v276_v63 = vadd.f32 1.0, %v664_v58  ;;  %612 = vmatmul.mubr.bf16.gmra.mrb[8].mxu1 %v298_v51  ;;  %v291_v2 = vmul.f32 %v275_v57, %v227_v33 }
 0x120   :  { %v274_v1 = vadd.f32 1.0, %v666_v9  ;;  %v289_v6 = vmul.f32 %v273_v60, %v225_v18 }
 0x121   :  { %v292_v3 = vmul.f32 %v276_v63, %v228_v61 }
 0x122   :  { %v290_v7 = vmul.f32 %v274_v1, %v226_v39 }
 0x123   :  { %v300_v8 = vpack.c.bf16 %v292_v3, %v291_v2 }
 0x124   :  { %v299_v10 = vpack.c.bf16 %v290_v7, %v289_v6 }
 0x126   :  { %615 = vmatprep.mubr.bf16.mxu1 %v299_v10 }
 0x127   :  { %616 = vmatmul.mubr.bf16.gmra.mrb[12].mxu1 %v300_v8 }
 0x1e2   :  { %v605_v12 = vpop.f32.mrb[0].mxu1 }
 0x1e3   :  { %v415_v55 = vadd.f32 %v605_v12, %v514_v11  ;;  %v406_v17 = vpop.f32.mrb[1].mxu1 }
 0x1e4   :  { %v407_v23 = vadd.f32 %v514_v11, %v406_v17  ;;  %v606_v24 = vpop.f32.mrb[2].mxu1 }
 0x1e5   :  { %v471_v0 = vadd.f32 %v415_v55, %v742_v13  ;;  %v418_v54 = vadd.f32 %v606_v24, %v514_v11  ;;  %v409_v59 = vpop.f32.mrb[3].mxu1 }
 0x1e6   :  { %v469_v29 = vadd.f32 %v407_v23, %v712_v4  ;;  %v410_v30 = vadd.f32 %v514_v11, %v409_v59 }
 0x1e7   :  { %487 = vst [vmem:[%s942_s5 + $0x10] sm:$0xff] %v471_v0  ;;  %v472_v56 = vadd.f32 %v418_v54, %v747_v14 }
 0x1e8   :  { %485 = vst [vmem:[%s942_s5] sm:$0xff] %v469_v29  ;;  %v470_v62 = vadd.f32 %v410_v30, %v717_v5 }
 0x1e9   :  { %488 = vst [vmem:[%s942_s5 + $0x18] sm:$0xff] %v472_v56 }
 0x1ea   :  { %486 = vst [vmem:[%s942_s5 + $0x8] sm:$0xff] %v470_v62  ;;  %v609_v4 = vpop.f32.mrb[4].mxu1 }
 0x1eb   :  { %v431_v13 = vadd.f32 %v609_v4, %v514_v11  ;;  %v422_v34 = vpop.f32.mrb[5].mxu1 }
 0x1ec   :  { %v423_v35 = vadd.f32 %v514_v11, %v422_v34  ;;  %v610_v36 = vpop.f32.mrb[6].mxu1 }
 0x1ed   :  { %v475_v14 = vadd.f32 %v431_v13, %v766_v19  ;;  %v434_v37 = vadd.f32 %v610_v36, %v514_v11  ;;  %v425_v38 = vpop.f32.mrb[7].mxu1 }
 0x1ee   :  { %v473_v41 = vadd.f32 %v423_v35, %v752_v15  ;;  %v426_v5 = vadd.f32 %v514_v11, %v425_v38 }
 0x1ef   :  { %491 = vst [vmem:[%s942_s5 + $0x30] sm:$0xff] %v475_v14  ;;  %v476_v42 = vadd.f32 %v434_v37, %v771_v20 }
 0x1f0   :  { %489 = vst [vmem:[%s942_s5 + $0x20] sm:$0xff] %v473_v41  ;;  %v474_v43 = vadd.f32 %v426_v5, %v757_v16 }
 0x1f1   :  { %492 = vst [vmem:[%s942_s5 + $0x38] sm:$0xff] %v476_v42 }
 0x1f2   :  { %490 = vst [vmem:[%s942_s5 + $0x28] sm:$0xff] %v474_v43  ;;  %v613_v15 = vpop.f32.mrb[8].mxu1 }
 0x1f3   :  { %v447_v19 = vadd.f32 %v613_v15, %v514_v11  ;;  %v438_v40 = vpop.f32.mrb[9].mxu1 }
 0x1f4   :  { %v439_v45 = vadd.f32 %v514_v11, %v438_v40  ;;  %v614_v46 = vpop.f32.mrb[10].mxu1 }
 0x1f5   :  { %v479_v20 = vadd.f32 %v447_v19, %v790_v25  ;;  %v450_v44 = vadd.f32 %v614_v46, %v514_v11  ;;  %v441_v47 = vpop.f32.mrb[11].mxu1 }
 0x1f6   :  { %v477_v48 = vadd.f32 %v439_v45, %v776_v21  ;;  %v442_v16 = vadd.f32 %v514_v11, %v441_v47 }
 0x1f7   :  { %495 = vst [vmem:[%s942_s5 + $0x50] sm:$0xff] %v479_v20  ;;  %v480_v49 = vadd.f32 %v450_v44, %v795_v26 }
 0x1f8   :  { %493 = vst [vmem:[%s942_s5 + $0x40] sm:$0xff] %v477_v48  ;;  %v478_v51 = vadd.f32 %v442_v16, %v781_v22 }
 0x1f9   :  { %496 = vst [vmem:[%s942_s5 + $0x58] sm:$0xff] %v480_v49 }
 0x1fa   :  { %494 = vst [vmem:[%s942_s5 + $0x48] sm:$0xff] %v478_v51  ;;  %v617_v21 = vpop.f32.mrb[12].mxu1 }
 0x1fb   :  { %v463_v25 = vadd.f32 %v617_v21, %v514_v11  ;;  %v454_v52 = vpop.f32.mrb[13].mxu1 }
 0x1fc   :  { %v455_v50 = vadd.f32 %v514_v11, %v454_v52  ;;  %v618_v53 = vpop.f32.mrb[14].mxu1 }
 0x1fd   :  { %v483_v26 = vadd.f32 %v463_v25, %v814_v31  ;;  %v466_v57 = vadd.f32 %v618_v53, %v514_v11  ;;  %v457_v58 = vpop.f32.mrb[15].mxu1 }
 0x1fe   :  { %v481_v60 = vadd.f32 %v455_v50, %v800_v27  ;;  %v458_v22 = vadd.f32 %v514_v11, %v457_v58 }
 0x1ff   :  { %499 = vst [vmem:[%s942_s5 + $0x70] sm:$0xff] %v483_v26  ;;  %v484_v9 = vadd.f32 %v466_v57, %v819_v32 }
 0x200   :  { %497 = vst [vmem:[%s942_s5 + $0x60] sm:$0xff] %v481_v60  ;;  %v482_v33 = vadd.f32 %v458_v22, %v805_v28 }
 0x201   :  { %500 = vst [vmem:[%s942_s5 + $0x78] sm:$0xff] %v484_v9 }
 0x202   :  { %498 = vst [vmem:[%s942_s5 + $0x68] sm:$0xff] %v482_v33 }

</bundles_post_ra>
